<compile_context>
chip_gen: v7x
topology: tpu7x:2x2x1
jax: 0.10.0
libtpu: 0.0.40
codegen_flags: <defaults>
</compile_context>

<pallas_src>
import functools

import jax
import jax.numpy as jnp
from jax.experimental import pallas as pl
from jax.experimental.pallas import tpu as pltpu


def _apply_leaky_threshold(x, *, offset, scale, has_floor, ceil,
                           negative_slope, finite_max):
    """Elementwise math shared by the Pallas kernel and the jnp fallback.

    Constants are Python floats (weak-typed), so the math runs in x.dtype:
    native bf16/f16 on v6e/v7x, f32 otherwise.
    """
    x = (x - offset) * scale
    # torch.nan_to_num: NaN -> 0 first (min/max would propagate NaN),
    # then clamp +/-inf to the I/O dtype's finite max so downcasts stay finite.
    x = jnp.where(jnp.isnan(x), 0.0, x)
    x = jnp.clip(x, -finite_max, finite_max)
    if ceil is not None:
        if negative_slope == 0.0:
            x = jnp.minimum(x, ceil)                   # leaky_relu(slope=0) == clamp
        else:
            t = ceil - x                               # == -x + ceil
            t = jnp.where(t >= 0, t, negative_slope * t)
            x = ceil - t                               # == -(leaky_relu(...) - ceil)
    if has_floor:                                      # module only checks `is not None`
        if negative_slope == 0.0:
            x = jnp.maximum(x, 0.0)
        else:
            x = jnp.where(x >= 0, x, negative_slope * x)
    return x


def _leaky_threshold_kernel(x_ref, o_ref, *, compute_dtype, **params):
    x = x_ref[...].astype(compute_dtype)               # no-op when dtypes match
    o_ref[...] = _apply_leaky_threshold(x, **params).astype(o_ref.dtype)


_LANE_CANDIDATES = (8192, 4096, 2048, 1024, 512, 256, 128)


def _pick_lane_width(n):
    """Largest multiple-of-128 lane width that divides n; None if ragged."""
    for lane in _LANE_CANDIDATES:
        if n % lane == 0:
            return lane
    return None


def _default_block_bytes():
    """~2 MiB blocks on v5* (16 MiB default scoped VMEM), ~4 MiB on v6e/v7x
    (32 MiB default). in+out x double-buffers = 4x block -> always in budget."""
    try:
        kind = jax.devices()[0].device_kind.lower()
    except Exception:
        kind = ""
    if any(tag in kind for tag in ("v2", "v3", "v4", "v5")):
        return 2 * 1024 * 1024
    return 4 * 1024 * 1024


def leaky_threshold(x, *, x0=0.0, x1=1.0, floor=0.0, ceil=None,
                    negative_slope=0.0, target_block_bytes=None,
                    min_pallas_bytes=64 * 1024, donate=False):
    """Applies LeakyThreshold elementwise via a lane-dense Pallas TPU kernel."""
    if float(x1) == float(x0):
        # torch would hit a Python ZeroDivisionError here as well; be explicit.
        raise ValueError("LeakyThreshold requires x1 != x0 (scale = 1/(x1-x0)).")

    orig_shape = x.shape
    orig_dtype = x.dtype
    n = x.size
    itemsize = orig_dtype.itemsize

    # Native 16-bit math for bf16/f16 I/O (halves HBM bytes AND VALU work per
    # packed vreg on v6e/v7x); everything else computed in f32.
    if jnp.issubdtype(orig_dtype, jnp.floating) and itemsize <= 2:
        compute_dtype = orig_dtype
    else:
        compute_dtype = jnp.float32

    if jnp.issubdtype(orig_dtype, jnp.floating):
        finite_max = float(jnp.finfo(orig_dtype).max)
    else:
        finite_max = float(jnp.finfo(jnp.float32).max)

    params = dict(
        offset=float(x0),
        scale=1.0 / (float(x1) - float(x0)),
        has_floor=floor is not None,
        ceil=None if ceil is None else float(ceil),
        negative_slope=float(negative_slope),
        finite_max=finite_max,
    )

    lane = _pick_lane_width(n)
    # Tiny or lane-ragged tensors: skip pallas_call.  XLA fuses the elementwise
    # chain into one HBM read + one write, avoiding (a) fixed pallas/DMA
    # pipeline overhead on small tensors and (b) the pad + slice full-tensor
    # copies the previous version paid when n % 128 != 0.
    if lane is None or n * itemsize < min_pallas_bytes:
        y = _apply_leaky_threshold(x.astype(compute_dtype), **params)
        return y.astype(orig_dtype)

    rows = n // lane
    x2d = x.reshape(rows, lane)                         # free for contiguous input

    if target_block_bytes is None:
        target_block_bytes = _default_block_bytes()

    # Sublane granularity of the native tile: 8 (f32), 16 (bf16/f16), 32 (int8).
    sub = 8 * max(1, 4 // itemsize)
    if rows <= sub:
        block_rows = rows                               # full dim -> always legal
    else:
        # ~target_block_bytes per block ...
        tgt = max(sub, (target_block_bytes // (lane * itemsize)) // sub * sub)
        # ... but keep >= ~8 grid steps so each v7x TensorCore gets >= 4
        # iterations (prefetch[i+1]/compute[i]/writeback[i-1] overlap); also
        # gives single-TC v5e/v6e a fully warmed pipeline.
        cap = max(sub, ((pl.cdiv(rows, 8) + sub - 1) // sub) * sub)
        block_rows = min(tgt, cap)
    grid = (pl.cdiv(rows, block_rows),)                 # partial final block OK (masked)

    kernel = functools.partial(_leaky_threshold_kernel,
                               compute_dtype=compute_dtype, **params)

    call_kwargs = {}
    if donate:
        # Caller promises x is dead after this call: reuse its HBM buffer.
        call_kwargs["input_output_aliases"] = {0: 0}

    out2d = pl.pallas_call(
        kernel,
        out_shape=jax.ShapeDtypeStruct((rows, lane), orig_dtype),
        grid=grid,
        in_specs=[pl.BlockSpec((block_rows, lane), lambda i: (i, 0))],
        out_specs=pl.BlockSpec((block_rows, lane), lambda i: (i, 0)),
        compiler_params=pltpu.CompilerParams(
            dimension_semantics=("parallel",)),
        **call_kwargs,
    )(x2d)

    return out2d.reshape(orig_shape)


def _reference(x, *, x0=0.0, x1=1.0, floor=0.0, ceil=None, negative_slope=0.0):
    """Literal jnp transcription of the torch forward (leaky_relu via where),
    evaluated in x.dtype so it matches both the f32 and native-bf16 paths."""
    y = (x - float(x0)) * (1.0 / (float(x1) - float(x0)))
    fmax = float(jnp.finfo(x.dtype).max)
    y = jnp.where(jnp.isnan(y), 0.0, y)
    y = jnp.where(y > fmax, fmax, y)
    y = jnp.where(y < -fmax, -fmax, y)
    if ceil is not None:
        t = -y + float(ceil)
        t = jnp.where(t >= 0, t, float(negative_slope) * t)
        y = -1.0 * (t - float(ceil))
    if floor is not None:
        y = jnp.where(y >= 0, y, float(negative_slope) * y)
    return y.astype(x.dtype)


if __name__ == "__main__":
    k1, k2, k3, k4, k5 = jax.random.split(jax.random.PRNGKey(0), 5)

    # 1) Main Pallas path: f32 NCHW, non-trivial x0/x1, ceil + floor, leaky slope.
    #    Exercises nan_to_num (NaN / +inf / -inf injected).
    cfg = dict(x0=-0.5, x1=1.5, floor=0.0, ceil=1.0, negative_slope=0.01)
    x = jax.random.normal(k1, (2, 4, 64, 64), dtype=jnp.float32) * 2.0
    x = x.at[0, 0, 0, 0].set(jnp.nan)
    x = x.at[0, 1, 2, 3].set(jnp.inf)
    x = x.at[1, 3, 5, 7].set(-jnp.inf)
    out = jax.block_until_ready(leaky_threshold(x, **cfg))
    assert out.shape == x.shape and out.dtype == x.dtype
    assert jnp.allclose(out, _reference(x, **cfg), atol=1e-6, rtol=1e-6), \
        "f32 ceil+floor mismatch"

    # 2) Module defaults (floor=0, ceil=None, slope=0 -> min/max specialization)
    #    on a multi-block grid (48 rows x 8192 lanes -> 6 pipelined grid steps).
    xb = jax.random.normal(k2, (4, 8, 96, 128), dtype=jnp.float32)
    out_b = jax.block_until_ready(leaky_threshold(xb))
    assert jnp.allclose(out_b, _reference(xb), atol=1e-6, rtol=1e-6), \
        "default-config mismatch"

    # 3) bf16 I/O -> native bf16 compute inside the kernel.
    xh = jax.random.normal(k3, (2, 8, 32, 64), dtype=jnp.float32).astype(jnp.bfloat16)
    cfg_h = dict(x0=-1.0, x1=1.0, floor=0.0, ceil=1.0, negative_slope=0.0)
    out_h = jax.block_until_ready(leaky_threshold(xh, **cfg_h))
    assert out_h.dtype == jnp.bfloat16
    assert jnp.allclose(out_h.astype(jnp.float32),
                        _reference(xh, **cfg_h).astype(jnp.float32),
                        atol=1e-2, rtol=1e-2), "bf16 native-compute mismatch"

    # 4) Tiny tensor (below min_pallas_bytes) and lane-ragged tensor take the
    #    fused-jnp fallback (no pallas overhead, no pad/slice copies).
    xs = jax.random.normal(k4, (2, 4, 16, 16), dtype=jnp.float32)
    out_s = jax.block_until_ready(leaky_threshold(xs, **cfg))
    assert jnp.allclose(out_s, _reference(xs, **cfg), atol=1e-6, rtol=1e-6), \
        "small-tensor fallback mismatch"

    xr = jax.random.normal(k5, (3, 5, 7), dtype=jnp.float32)
    out_r = jax.block_until_ready(
        leaky_threshold(xr, x0=-1.0, x1=2.0, negative_slope=0.1))
    assert jnp.allclose(out_r,
                        _reference(xr, x0=-1.0, x1=2.0, negative_slope=0.1),
                        atol=1e-6, rtol=1e-6), "ragged fallback mismatch"

    print("KERNEL_OK")
</pallas_src>

<mosaic_0001>
module attributes {stable_mosaic.version = 11 : i64} {
  func.func @_leaky_threshold_kernel(%arg0: i32, %arg1: memref<4x8192xf32, #tpu.memory_space<vmem>>, %arg2: memref<4x8192xf32, #tpu.memory_space<vmem>>) attributes {dimension_semantics = [#tpu.dimension_semantics<parallel>], iteration_bounds = array<i64: 1>, scalar_prefetch = 0 : i64, scratch_operands = 0 : i64, tpu.core_type = #tpu.core_type<tc>, window_params = [{transform_indices = @transform_0, window_bounds = array<i64: 4, 8192>}, {transform_indices = @transform_1, window_bounds = array<i64: 4, 8192>}]} {
    %c0 = arith.constant 0 : index
    %c0_0 = arith.constant 0 : index
    %0 = vector.load %arg1[%c0, %c0_0] : memref<4x8192xf32, #tpu.memory_space<vmem>>, vector<4x8192xf32>
    %cst = arith.constant -5.000000e-01 : f32
    %1 = vector.broadcast %cst : f32 to vector<4x8192xf32>
    %2 = arith.subf %0, %1 : vector<4x8192xf32>
    %cst_1 = arith.constant 5.000000e-01 : f32
    %3 = vector.broadcast %cst_1 : f32 to vector<4x8192xf32>
    %4 = arith.mulf %2, %3 : vector<4x8192xf32>
    %5 = arith.cmpf one, %4, %4 : vector<4x8192xf32>
    %cst_2 = arith.constant 0.000000e+00 : f32
    %6 = vector.broadcast %cst_2 : f32 to vector<4x8192xf32>
    %7 = arith.select %5, %6, %4 : vector<4x8192xi1>, vector<4x8192xf32>
    %cst_3 = arith.constant -3.40282347E+38 : f32
    %cst_4 = arith.constant 3.40282347E+38 : f32
    %8 = vector.broadcast %cst_3 : f32 to vector<4x8192xf32>
    %9 = arith.maximumf %8, %7 : vector<4x8192xf32>
    %10 = vector.broadcast %cst_4 : f32 to vector<4x8192xf32>
    %11 = arith.minimumf %10, %9 : vector<4x8192xf32>
    %cst_5 = arith.constant 1.000000e+00 : f32
    %12 = vector.broadcast %cst_5 : f32 to vector<4x8192xf32>
    %13 = arith.subf %12, %11 : vector<4x8192xf32>
    %cst_6 = arith.constant 0.000000e+00 : f32
    %14 = vector.broadcast %cst_6 : f32 to vector<4x8192xf32>
    %15 = arith.cmpf oge, %13, %14 : vector<4x8192xf32>
    %cst_7 = arith.constant 0.00999999977 : f32
    %16 = vector.broadcast %cst_7 : f32 to vector<4x8192xf32>
    %17 = arith.mulf %16, %13 : vector<4x8192xf32>
    %18 = arith.select %15, %13, %17 : vector<4x8192xi1>, vector<4x8192xf32>
    %cst_8 = arith.constant 1.000000e+00 : f32
    %19 = vector.broadcast %cst_8 : f32 to vector<4x8192xf32>
    %20 = arith.subf %19, %18 : vector<4x8192xf32>
    %cst_9 = arith.constant 0.000000e+00 : f32
    %21 = vector.broadcast %cst_9 : f32 to vector<4x8192xf32>
    %22 = arith.cmpf oge, %20, %21 : vector<4x8192xf32>
    %cst_10 = arith.constant 0.00999999977 : f32
    %23 = vector.broadcast %cst_10 : f32 to vector<4x8192xf32>
    %24 = arith.mulf %23, %20 : vector<4x8192xf32>
    %25 = arith.select %22, %20, %24 : vector<4x8192xi1>, vector<4x8192xf32>
    %c0_11 = arith.constant 0 : index
    %c0_12 = arith.constant 0 : index
    %26 = vector.load %arg2[%c0_11, %c0_12] : memref<4x8192xf32, #tpu.memory_space<vmem>>, vector<4x8192xf32>
    tpu.vector_store %arg2[%c0_11, %c0_12], %25 {strides = array<i32>} : memref<4x8192xf32, #tpu.memory_space<vmem>>, vector<4x8192xf32>,
    return
  }
  func.func @transform_0(%arg0: i32) -> (i32, i32) {
    %c0_i32 = arith.constant 0 : i32
    %c0_i32_0 = arith.constant 0 : i32
    return %arg0, %c0_i32 : i32, i32
  }
  func.func @transform_1(%arg0: i32) -> (i32, i32) {
    %c0_i32 = arith.constant 0 : i32
    %c0_i32_0 = arith.constant 0 : i32
    return %arg0, %c0_i32 : i32, i32
  }
}

</mosaic_0001>

<bundles_post_ra>
// kernel: tpu_custom_call.1
= control target key start
LH: loop header
LB: loop body
LE: loop exit
PB: predicated region body
PF: predicated region fallthrough
CT: control target
= control target key end

     0   :  { %6 = vsyncpa [#allocation3], 0  ;;  %s698_s0 = inlined_call_operand.hbm [shape: f32[4,8192], index: 0, kind: input, shape index: {}]   ;;  %s699_s1 = inlined_call_operand.hbm [shape: f32[4,8192], index: 1, kind: output, shape index: {}]  }
   0x1   :  { %7 = vsyncpa [#allocation4], 0  ;;  %s662_s6 = smov [#allocation2]   ;;  %s614_s10 = scalar_lea.hbm %s698_s0, 4096 }
   0x2   :  { %s14_s7 = sshll.u32 %s662_s6, 4  ;;  %p615_p0 = scmp.ne.s32.totalorder %s698_s0, %s614_s10  ;;  %s15_s7 = int_to_ptr.vmem [resolvable:$true] %s14_s7 }
   0x3   :  { %p618_p1 = scmp.lt.u32.totalorder %s614_s10, %s698_s0 }
   0x5   :  { %p620_p2 = pnand %p618_p1, %p615_p0 }
   0x7   :  { %623 = shalt.err (!%p620_p2)
}
   0x8   :  { %s624_s15 = scalar_lea.vmem %s15_s7, 4096  ;;  %p629_p4 = scmp.lt.s32.totalorder %s15_s7, %s15_s7 }
   0x9   :  { %p625_p3 = scmp.ne.s32.totalorder %s15_s7, %s624_s15  ;;  %p630_p5 = scmp.lt.s32.totalorder %s624_s15, %s624_s15 }
   0xb   :  { %p631_p6 = por %p630_p5, %p629_p4 }
   0xd   :  { %p632_p7 = pnand %p631_p6, %p625_p3 }
   0xf   :  { %635 = shalt.err (!%p632_p7)
}
  0x10   :  { %17 = dma.hbm_to_vmem [thread:$0]  %s698_s0, 4096, %s15_s7, [#allocation3]  }
  0x11   :  { %658 = dma.done.wait [#allocation3], 4096  }
  0x12   :  { %659 = vsyncadd [#allocation3], 4294963200  ;;  %v21_v0 = vld [vmem:[#allocation2] sm:$0xff]  ;;  %v22_v1 = vld [vmem:[#allocation2 + $0x8] sm:$0xff]  ;;  %s663_s0 = smov [#allocation5]  }
  0x13   :  { %v23_v2 = vld [vmem:[#allocation2 + $0x10] sm:$0xff]  ;;  %v548_v3 = vadd.f32 0.5, %v21_v0  ;;  %v549_v4 = vadd.f32 0.5, %v22_v1  ;;  %v24_v6 = vld [vmem:[#allocation2 + $0x18] sm:$0xff]  ;;  %v25_v7 = vld [vmem:[#allocation2 + $0x20] sm:$0xff]  ;;  %s539_s18 = sshll.u32 %s663_s0, 4  ;;  %s540_s18 = int_to_ptr.vmem [resolvable:$true] %s539_s18 }
  0x14   :  { %v550_v5 = vadd.f32 0.5, %v23_v2  ;;  %v26_v8 = vld [vmem:[#allocation2 + $0x28] sm:$0xff]  ;;  %v551_v9 = vadd.f32 0.5, %v24_v6  ;;  %v552_v10 = vadd.f32 0.5, %v25_v7  ;;  %v27_v12 = vld [vmem:[#allocation2 + $0x30] sm:$0xff]  ;;  %v28_v13 = vld [vmem:[#allocation2 + $0x38] sm:$0xff]  ;;  %p641_p9 = scmp.lt.s32.totalorder %s540_s18, %s540_s18 }
  0x15   :  { %v553_v11 = vadd.f32 0.5, %v26_v8  ;;  %v85_v14 = vmul.f32 0.5, %v548_v3  ;;  %v86_v15 = vmul.f32 0.5, %v549_v4  ;;  %v554_v17 = vadd.f32 0.5, %v27_v12  ;;  %v29_v2 = vld [vmem:[#allocation2 + $0x40] sm:$0xff]  ;;  %v30_v3 = vld [vmem:[#allocation2 + $0x48] sm:$0xff] }
  0x16   :  { %v87_v16 = vmul.f32 0.5, %v550_v5  ;;  %v88_v18 = vmul.f32 0.5, %v551_v9  ;;  %v89_v19 = vmul.f32 0.5, %v552_v10  ;;  %v555_v21 = vadd.f32 0.5, %v28_v13  ;;  %v31_v4 = vld [vmem:[#allocation2 + $0x50] sm:$0xff]  ;;  %v32_v13 = vld [vmem:[#allocation2 + $0x58] sm:$0xff] }
  0x17   :  { %v90_v20 = vmul.f32 0.5, %v553_v11  ;;  %vm117_vm0 = vcmp.ne.f32.partialorder %v85_v14, %v85_v14  ;;  %vm118_vm1 = vcmp.ne.f32.partialorder %v86_v15, %v86_v15  ;;  %v91_v22 = vmul.f32 0.5, %v554_v17  ;;  %s636_s19 = scalar_lea.vmem %s540_s18, 4096 }
  0x18   :  { %vm119_vm2 = vcmp.ne.f32.partialorder %v87_v16, %v87_v16  ;;  %v149_v23 = vsel %vm117_vm0, 0.0, %v85_v14  ;;  %v150_v24 = vsel %vm118_vm1, 0.0, %v86_v15  ;;  %vm120_vm3 = vcmp.ne.f32.partialorder %v88_v18, %v88_v18  ;;  %v33_v14 = vld [vmem:[#allocation2 + $0x60] sm:$0xff]  ;;  %p637_p8 = scmp.ne.s32.totalorder %s540_s18, %s636_s19  ;;  %p642_p10 = scmp.lt.s32.totalorder %s636_s19, %s636_s19 }
  0x19   :  { %v151_v25 = vsel %vm119_vm2, 0.0, %v87_v16  ;;  %v580_v26 = vclamps-f32 %v149_v23, 3.4028235e+38  ;;  %v581_v27 = vclamps-f32 %v150_v24, 3.4028235e+38  ;;  %vm121_vm4 = vcmp.ne.f32.partialorder %v89_v19, %v89_v19 }
  0x1a   :  { %v582_v28 = vclamps-f32 %v151_v25, 3.4028235e+38  ;;  %v152_v29 = vsel %vm120_vm3, 0.0, %v88_v18  ;;  %v153_v30 = vsel %vm121_vm4, 0.0, %v89_v19  ;;  %vm122_vm5 = vcmp.ne.f32.partialorder %v90_v20, %v90_v20  ;;  %p643_p11 = por %p642_p10, %p641_p9 }
  0x1b   :  { %vm123_vm6 = vcmp.ne.f32.partialorder %v91_v22, %v91_v22  ;;  %v245_v31 = vsub.f32 1.0, %v580_v26  ;;  %v246_v32 = vsub.f32 1.0, %v581_v27  ;;  %v583_v34 = vclamps-f32 %v152_v29, 3.4028235e+38 }
  0x1c   :  { %v247_v33 = vsub.f32 1.0, %v582_v28  ;;  %v584_v35 = vclamps-f32 %v153_v30, 3.4028235e+38  ;;  %v154_v36 = vsel %vm122_vm5, 0.0, %v90_v20  ;;  %v155_v37 = vsel %vm123_vm6, 0.0, %v91_v22  ;;  %v34_v30 = vld [vmem:[#allocation2 + $0x68] sm:$0xff]  ;;  %p644_p12 = pnand %p643_p11, %p637_p8 }
  0x1d   :  { %v92_v38 = vmul.f32 0.5, %v555_v21  ;;  %vm277_vm7 = vcmp.ge.f32.partialorder %v245_v31, 0.0  ;;  %v309_v39 = vmul.f32 0.01, %v245_v31  ;;  %vm278_vm8 = vcmp.ge.f32.partialorder %v246_v32, 0.0 }
  0x1e   :  { %v310_v40 = vmul.f32 0.01, %v246_v32  ;;  %vm279_vm9 = vcmp.ge.f32.partialorder %v247_v33, 0.0  ;;  %v311_v41 = vmul.f32 0.01, %v247_v33  ;;  %v248_v42 = vsub.f32 1.0, %v583_v34 }
  0x1f   :  { %v249_v43 = vsub.f32 1.0, %v584_v35  ;;  %v341_v44 = vsel %vm277_vm7, %v245_v31, %v309_v39  ;;  %v585_v46 = vclamps-f32 %v154_v36, 3.4028235e+38  ;;  %v586_v47 = vclamps-f32 %v155_v37, 3.4028235e+38  ;;  %v35_v35 = vld [vmem:[#allocation2 + $0x70] sm:$0xff] }
  0x20   :  { %v342_v45 = vsel %vm278_vm8, %v246_v32, %v310_v40  ;;  %v373_v48 = vsub.f32 1.0, %v341_v44  ;;  %v343_v50 = vsel %vm279_vm9, %v247_v33, %v311_v41  ;;  %vm280_vm10 = vcmp.ge.f32.partialorder %v248_v42, 0.0 }
  0x21   :  { %v374_v49 = vsub.f32 1.0, %v342_v45  ;;  %v375_v51 = vsub.f32 1.0, %v343_v50  ;;  %v312_v52 = vmul.f32 0.01, %v248_v42  ;;  %vm281_vm11 = vcmp.ge.f32.partialorder %v249_v43, 0.0 }
  0x22   :  { %v313_v53 = vmul.f32 0.01, %v249_v43  ;;  %vm405_vm12 = vcmp.ge.f32.partialorder %v373_v48, 0.0  ;;  %v437_v54 = vmul.f32 0.01, %v373_v48  ;;  %v250_v0 = vsub.f32 1.0, %v585_v46 }
  0x23   :  { %vm406_vm13 = vcmp.ge.f32.partialorder %v374_v49, 0.0  ;;  %v438_v55 = vmul.f32 0.01, %v374_v49  ;;  %vm407_vm14 = vcmp.ge.f32.partialorder %v375_v51, 0.0  ;;  %v439_v56 = vmul.f32 0.01, %v375_v51 }
  0x24   :  { %v344_v57 = vsel %vm280_vm10, %v248_v42, %v312_v52  ;;  %v345_v58 = vsel %vm281_vm11, %v249_v43, %v313_v53  ;;  %v469_v59 = vsel %vm405_vm12, %v373_v48, %v437_v54  ;;  %v251_v1 = vsub.f32 1.0, %v586_v47  ;;  %v36_v54 = vld [vmem:[#allocation2 + $0x78] sm:$0xff] }
  0x25   :  { %v470_v60 = vsel %vm406_vm13, %v374_v49, %v438_v55  ;;  %v376_v61 = vsub.f32 1.0, %v344_v57  ;;  %v377_v62 = vsub.f32 1.0, %v345_v58  ;;  %501 = vst [vmem:[#allocation5] sm:$0xff] %v469_v59  ;;  %v471_v63 = vsel %vm407_vm14, %v375_v51, %v439_v56 }
  0x26   :  { %502 = vst [vmem:[#allocation5 + $0x8] sm:$0xff] %v470_v60  ;;  %vm124_vm15 = vcmp.ne.f32.partialorder %v92_v38, %v92_v38  ;;  %503 = vst [vmem:[#allocation5 + $0x10] sm:$0xff] %v471_v63  ;;  %vm282_vm2 = vcmp.ge.f32.partialorder %v250_v0, 0.0  ;;  %v314_v7 = vmul.f32 0.01, %v250_v0  ;;  %vm283_vm3 = vcmp.ge.f32.partialorder %v251_v1, 0.0 }
  0x27   :  { %vm408_vm0 = vcmp.ge.f32.partialorder %v376_v61, 0.0  ;;  %v440_v5 = vmul.f32 0.01, %v376_v61  ;;  %vm409_vm1 = vcmp.ge.f32.partialorder %v377_v62, 0.0  ;;  %v441_v6 = vmul.f32 0.01, %v377_v62 }
  0x28   :  { %v315_v8 = vmul.f32 0.01, %v251_v1  ;;  %v156_v11 = vsel %vm124_vm15, 0.0, %v92_v38  ;;  %v556_v12 = vadd.f32 0.5, %v29_v2  ;;  %v346_v15 = vsel %vm282_vm2, %v250_v0, %v314_v7 }
  0x29   :  { %v472_v9 = vsel %vm408_vm0, %v376_v61, %v440_v5  ;;  %v473_v10 = vsel %vm409_vm1, %v377_v62, %v441_v6  ;;  %v587_v17 = vclamps-f32 %v156_v11, 3.4028235e+38  ;;  %v557_v18 = vadd.f32 0.5, %v30_v3 }
  0x2a   :  { %504 = vst [vmem:[#allocation5 + $0x18] sm:$0xff] %v472_v9  ;;  %505 = vst [vmem:[#allocation5 + $0x20] sm:$0xff] %v473_v10  ;;  %v347_v16 = vsel %vm283_vm3, %v251_v1, %v315_v8  ;;  %v378_v19 = vsub.f32 1.0, %v346_v15  ;;  %v93_v21 = vmul.f32 0.5, %v556_v12  ;;  %v558_v22 = vadd.f32 0.5, %v31_v4  ;;  %v37_v10 = vld [vmem:[#allocation2 + $0x80] sm:$0xff] }
  0x2b   :  { %v379_v20 = vsub.f32 1.0, %v347_v16  ;;  %v252_v23 = vsub.f32 1.0, %v587_v17  ;;  %v94_v24 = vmul.f32 0.5, %v557_v18  ;;  %v559_v25 = vadd.f32 0.5, %v32_v13 }
  0x2c   :  { %v560_v26 = vadd.f32 0.5, %v33_v14  ;;  %vm410_vm4 = vcmp.ge.f32.partialorder %v378_v19, 0.0  ;;  %v442_v27 = vmul.f32 0.01, %v378_v19  ;;  %vm125_vm7 = vcmp.ne.f32.partialorder %v93_v21, %v93_v21 }
  0x2d   :  { %vm411_vm5 = vcmp.ge.f32.partialorder %v379_v20, 0.0  ;;  %v443_v28 = vmul.f32 0.01, %v379_v20  ;;  %vm284_vm6 = vcmp.ge.f32.partialorder %v252_v23, 0.0  ;;  %v316_v29 = vmul.f32 0.01, %v252_v23 }
  0x2e   :  { %vm126_vm8 = vcmp.ne.f32.partialorder %v94_v24, %v94_v24  ;;  %v474_v31 = vsel %vm410_vm4, %v378_v19, %v442_v27  ;;  %v157_v33 = vsel %vm125_vm7, 0.0, %v93_v21  ;;  %v95_v39 = vmul.f32 0.5, %v558_v22 }
  0x2f   :  { %v475_v32 = vsel %vm411_vm5, %v379_v20, %v443_v28  ;;  %v158_v34 = vsel %vm126_vm8, 0.0, %v94_v24  ;;  %506 = vst [vmem:[#allocation5 + $0x28] sm:$0xff] %v474_v31  ;;  %v348_v36 = vsel %vm284_vm6, %v252_v23, %v316_v29  ;;  %v588_v37 = vclamps-f32 %v157_v33, 3.4028235e+38 }
  0x30   :  { %507 = vst [vmem:[#allocation5 + $0x30] sm:$0xff] %v475_v32  ;;  %v589_v38 = vclamps-f32 %v158_v34, 3.4028235e+38  ;;  %v380_v40 = vsub.f32 1.0, %v348_v36  ;;  %v96_v41 = vmul.f32 0.5, %v559_v25  ;;  %v97_v42 = vmul.f32 0.5, %v560_v26 }
  0x31   :  { %v561_v43 = vadd.f32 0.5, %v34_v30  ;;  %v253_v44 = vsub.f32 1.0, %v588_v37  ;;  %vm127_vm9 = vcmp.ne.f32.partialorder %v95_v39, %v95_v39  ;;  %v562_v46 = vadd.f32 0.5, %v35_v35  ;;  %v38_v26 = vld [vmem:[#allocation2 + $0x88] sm:$0xff] }
  0x32   :  { %v254_v45 = vsub.f32 1.0, %v589_v38  ;;  %vm412_vm10 = vcmp.ge.f32.partialorder %v380_v40, 0.0  ;;  %v444_v47 = vmul.f32 0.01, %v380_v40  ;;  %v159_v48 = vsel %vm127_vm9, 0.0, %v95_v39 }
  0x33   :  { %vm128_vm11 = vcmp.ne.f32.partialorder %v96_v41, %v96_v41  ;;  %vm285_vm12 = vcmp.ge.f32.partialorder %v253_v44, 0.0  ;;  %v317_v49 = vmul.f32 0.01, %v253_v44  ;;  %v590_v52 = vclamps-f32 %v159_v48, 3.4028235e+38 }
  0x34   :  { %vm286_vm13 = vcmp.ge.f32.partialorder %v254_v45, 0.0  ;;  %v318_v50 = vmul.f32 0.01, %v254_v45  ;;  %v476_v51 = vsel %vm412_vm10, %v380_v40, %v444_v47  ;;  %v160_v53 = vsel %vm128_vm11, 0.0, %v96_v41 }
  0x35   :  { %vm129_vm14 = vcmp.ne.f32.partialorder %v97_v42, %v97_v42  ;;  %508 = vst [vmem:[#allocation5 + $0x38] sm:$0xff] %v476_v51  ;;  %v349_v55 = vsel %vm285_vm12, %v253_v44, %v317_v49  ;;  %v591_v57 = vclamps-f32 %v160_v53, 3.4028235e+38  ;;  %v255_v61 = vsub.f32 1.0, %v590_v52  ;;  %v40_v44 = vld [vmem:[#allocation2 + $0x98] sm:$0xff] }
  0x36   :  { %v350_v56 = vsel %vm286_vm13, %v254_v45, %v318_v50  ;;  %v161_v58 = vsel %vm129_vm14, 0.0, %v97_v42  ;;  %v381_v59 = vsub.f32 1.0, %v349_v55  ;;  %v98_v0 = vmul.f32 0.5, %v561_v43  ;;  %v39_v43 = vld [vmem:[#allocation2 + $0x90] sm:$0xff] }
  0x37   :  { %v382_v60 = vsub.f32 1.0, %v350_v56  ;;  %v592_v62 = vclamps-f32 %v161_v58, 3.4028235e+38  ;;  %v256_v63 = vsub.f32 1.0, %v591_v57  ;;  %v99_v1 = vmul.f32 0.5, %v562_v46 }
  0x38   :  { %v563_v2 = vadd.f32 0.5, %v36_v54  ;;  %vm413_vm15 = vcmp.ge.f32.partialorder %v381_v59, 0.0  ;;  %v445_v3 = vmul.f32 0.01, %v381_v59  ;;  %vm287_vm1 = vcmp.ge.f32.partialorder %v255_v61, 0.0 }
  0x39   :  { %vm414_vm0 = vcmp.ge.f32.partialorder %v382_v60, 0.0  ;;  %v446_v4 = vmul.f32 0.01, %v382_v60  ;;  %v319_v5 = vmul.f32 0.01, %v255_v61  ;;  %vm288_vm2 = vcmp.ge.f32.partialorder %v256_v63, 0.0 }
  0x3a   :  { %v320_v6 = vmul.f32 0.01, %v256_v63  ;;  %v477_v7 = vsel %vm413_vm15, %v381_v59, %v445_v3  ;;  %v257_v9 = vsub.f32 1.0, %v592_v62  ;;  %vm130_vm3 = vcmp.ne.f32.partialorder %v98_v0, %v98_v0 }
  0x3b   :  { %v478_v8 = vsel %vm414_vm0, %v382_v60, %v446_v4  ;;  %509 = vst [vmem:[#allocation5 + $0x40] sm:$0xff] %v477_v7  ;;  %v351_v11 = vsel %vm287_vm1, %v255_v61, %v319_v5  ;;  %v162_v13 = vsel %vm130_vm3, 0.0, %v98_v0  ;;  %vm131_vm4 = vcmp.ne.f32.partialorder %v99_v1, %v99_v1  ;;  %v41_v0 = vld [vmem:[#allocation2 + $0xa0] sm:$0xff]  ;;  %v43_v7 = vld [vmem:[#allocation2 + $0xb0] sm:$0xff] }
  0x3c   :  { %510 = vst [vmem:[#allocation5 + $0x48] sm:$0xff] %v478_v8  ;;  %v352_v12 = vsel %vm288_vm2, %v256_v63, %v320_v6  ;;  %v383_v14 = vsub.f32 1.0, %v351_v11  ;;  %vm289_vm5 = vcmp.ge.f32.partialorder %v257_v9, 0.0  ;;  %v321_v16 = vmul.f32 0.01, %v257_v9 }
  0x3d   :  { %v384_v15 = vsub.f32 1.0, %v352_v12  ;;  %v593_v17 = vclamps-f32 %v162_v13, 3.4028235e+38  ;;  %v163_v18 = vsel %vm131_vm4, 0.0, %v99_v1  ;;  %v100_v19 = vmul.f32 0.5, %v563_v2  ;;  %v42_v2 = vld [vmem:[#allocation2 + $0xa8] sm:$0xff] }
  0x3e   :  { %v564_v20 = vadd.f32 0.5, %v37_v10  ;;  %vm415_vm6 = vcmp.ge.f32.partialorder %v383_v14, 0.0  ;;  %v447_v21 = vmul.f32 0.01, %v383_v14  ;;  %v353_v23 = vsel %vm289_vm5, %v257_v9, %v321_v16 }
  0x3f   :  { %vm416_vm7 = vcmp.ge.f32.partialorder %v384_v15, 0.0  ;;  %v448_v22 = vmul.f32 0.01, %v384_v15  ;;  %v258_v24 = vsub.f32 1.0, %v593_v17  ;;  %v594_v25 = vclamps-f32 %v163_v18, 3.4028235e+38 }
  0x40   :  { %vm132_vm8 = vcmp.ne.f32.partialorder %v100_v19, %v100_v19  ;;  %v479_v27 = vsel %vm415_vm6, %v383_v14, %v447_v21  ;;  %v385_v29 = vsub.f32 1.0, %v353_v23  ;;  %v101_v35 = vmul.f32 0.5, %v564_v20 }
  0x41   :  { %v480_v28 = vsel %vm416_vm7, %v384_v15, %v448_v22  ;;  %v164_v30 = vsel %vm132_vm8, 0.0, %v100_v19  ;;  %511 = vst [vmem:[#allocation5 + $0x50] sm:$0xff] %v479_v27  ;;  %vm290_vm9 = vcmp.ge.f32.partialorder %v258_v24, 0.0  ;;  %v322_v31 = vmul.f32 0.01, %v258_v24 }
  0x42   :  { %512 = vst [vmem:[#allocation5 + $0x58] sm:$0xff] %v480_v28  ;;  %v259_v32 = vsub.f32 1.0, %v594_v25  ;;  %v595_v33 = vclamps-f32 %v164_v30, 3.4028235e+38  ;;  %vm417_vm10 = vcmp.ge.f32.partialorder %v385_v29, 0.0  ;;  %v565_v36 = vadd.f32 0.5, %v38_v26 }
  0x43   :  { %v449_v34 = vmul.f32 0.01, %v385_v29  ;;  %v354_v37 = vsel %vm290_vm9, %v258_v24, %v322_v31  ;;  %vm133_vm12 = vcmp.ne.f32.partialorder %v101_v35, %v101_v35  ;;  %v566_v52 = vadd.f32 0.5, %v39_v43  ;;  %v45_v43 = vld [vmem:[#allocation2 + $0xc0] sm:$0xff] }
  0x44   :  { %vm291_vm11 = vcmp.ge.f32.partialorder %v259_v32, 0.0  ;;  %v323_v38 = vmul.f32 0.01, %v259_v32  ;;  %v260_v39 = vsub.f32 1.0, %v595_v33  ;;  %v386_v41 = vsub.f32 1.0, %v354_v37 }
  0x45   :  { %v481_v40 = vsel %vm417_vm10, %v385_v29, %v449_v34  ;;  %v102_v42 = vmul.f32 0.5, %v565_v36  ;;  %v165_v47 = vsel %vm133_vm12, 0.0, %v101_v35  ;;  %v567_v53 = vadd.f32 0.5, %v40_v44  ;;  %v44_v29 = vld [vmem:[#allocation2 + $0xb8] sm:$0xff]  ;;  %v46_v44 = vld [vmem:[#allocation2 + $0xc8] sm:$0xff] }
  0x46   :  { %513 = vst [vmem:[#allocation5 + $0x60] sm:$0xff] %v481_v40  ;;  %v355_v45 = vsel %vm291_vm11, %v259_v32, %v323_v38  ;;  %vm292_vm13 = vcmp.ge.f32.partialorder %v260_v39, 0.0  ;;  %v324_v46 = vmul.f32 0.01, %v260_v39  ;;  %vm418_vm14 = vcmp.ge.f32.partialorder %v386_v41, 0.0 }
  0x47   :  { %v450_v48 = vmul.f32 0.01, %v386_v41  ;;  %v387_v49 = vsub.f32 1.0, %v355_v45  ;;  %v596_v50 = vclamps-f32 %v165_v47, 3.4028235e+38  ;;  %vm134_vm15 = vcmp.ne.f32.partialorder %v102_v42, %v102_v42 }
  0x48   :  { %v356_v51 = vsel %vm292_vm13, %v260_v39, %v324_v46  ;;  %v166_v58 = vsel %vm134_vm15, 0.0, %v102_v42  ;;  %v103_v59 = vmul.f32 0.5, %v566_v52  ;;  %v104_v60 = vmul.f32 0.5, %v567_v53 }
  0x49   :  { %v482_v54 = vsel %vm418_vm14, %v386_v41, %v450_v48  ;;  %vm419_vm0 = vcmp.ge.f32.partialorder %v387_v49, 0.0  ;;  %v451_v55 = vmul.f32 0.01, %v387_v49  ;;  %v388_v56 = vsub.f32 1.0, %v356_v51  ;;  %v47_v48 = vld [vmem:[#allocation2 + $0xd0] sm:$0xff] }
  0x4a   :  { %514 = vst [vmem:[#allocation5 + $0x68] sm:$0xff] %v482_v54  ;;  %v261_v57 = vsub.f32 1.0, %v596_v50  ;;  %v597_v63 = vclamps-f32 %v166_v58, 3.4028235e+38  ;;  %vm135_vm3 = vcmp.ne.f32.partialorder %v103_v59, %v103_v59  ;;  %vm136_vm4 = vcmp.ne.f32.partialorder %v104_v60, %v104_v60 }
  0x4b   :  { %v483_v61 = vsel %vm419_vm0, %v387_v49, %v451_v55  ;;  %vm420_vm1 = vcmp.ge.f32.partialorder %v388_v56, 0.0  ;;  %v452_v62 = vmul.f32 0.01, %v388_v56  ;;  %v167_v5 = vsel %vm135_vm3, 0.0, %v103_v59 }
  0x4c   :  { %515 = vst [vmem:[#allocation5 + $0x70] sm:$0xff] %v483_v61  ;;  %vm293_vm2 = vcmp.ge.f32.partialorder %v261_v57, 0.0  ;;  %v325_v1 = vmul.f32 0.01, %v261_v57  ;;  %v262_v4 = vsub.f32 1.0, %v597_v63  ;;  %v168_v6 = vsel %vm136_vm4, 0.0, %v104_v60 }
  0x4d   :  { %v484_v3 = vsel %vm420_vm1, %v388_v56, %v452_v62  ;;  %v598_v9 = vclamps-f32 %v167_v5, 3.4028235e+38  ;;  %v599_v10 = vclamps-f32 %v168_v6, 3.4028235e+38  ;;  %v568_v11 = vadd.f32 0.5, %v41_v0 }
  0x4e   :  { %516 = vst [vmem:[#allocation5 + $0x78] sm:$0xff] %v484_v3  ;;  %v357_v8 = vsel %vm293_vm2, %v261_v57, %v325_v1  ;;  %vm294_vm5 = vcmp.ge.f32.partialorder %v262_v4, 0.0  ;;  %v326_v13 = vmul.f32 0.01, %v262_v4  ;;  %v569_v14 = vadd.f32 0.5, %v42_v2  ;;  %v48_v3 = vld [vmem:[#allocation2 + $0xd8] sm:$0xff] }
  0x4f   :  { %v389_v12 = vsub.f32 1.0, %v357_v8  ;;  %v263_v15 = vsub.f32 1.0, %v598_v9  ;;  %v264_v16 = vsub.f32 1.0, %v599_v10  ;;  %v105_v17 = vmul.f32 0.5, %v568_v11 }
  0x50   :  { %v570_v18 = vadd.f32 0.5, %v43_v7  ;;  %v358_v20 = vsel %vm294_vm5, %v262_v4, %v326_v13  ;;  %v106_v21 = vmul.f32 0.5, %v569_v14  ;;  %v571_v40 = vadd.f32 0.5, %v44_v29 }
  0x51   :  { %vm421_vm6 = vcmp.ge.f32.partialorder %v389_v12, 0.0  ;;  %v453_v19 = vmul.f32 0.01, %v389_v12  ;;  %v390_v22 = vsub.f32 1.0, %v358_v20  ;;  %vm295_vm7 = vcmp.ge.f32.partialorder %v263_v15, 0.0 }
  0x52   :  { %v327_v23 = vmul.f32 0.01, %v263_v15  ;;  %vm296_vm8 = vcmp.ge.f32.partialorder %v264_v16, 0.0  ;;  %v328_v25 = vmul.f32 0.01, %v264_v16  ;;  %vm137_vm9 = vcmp.ne.f32.partialorder %v105_v17, %v105_v17 }
  0x53   :  { %v485_v24 = vsel %vm421_vm6, %v389_v12, %v453_v19  ;;  %vm138_vm10 = vcmp.ne.f32.partialorder %v106_v21, %v106_v21  ;;  %vm422_vm11 = vcmp.ge.f32.partialorder %v390_v22, 0.0  ;;  %v454_v26 = vmul.f32 0.01, %v390_v22 }
  0x54   :  { %517 = vst [vmem:[#allocation5 + $0x80] sm:$0xff] %v485_v24  ;;  %v359_v27 = vsel %vm295_vm7, %v263_v15, %v327_v23  ;;  %v169_v28 = vsel %vm137_vm9, 0.0, %v105_v17  ;;  %v360_v31 = vsel %vm296_vm8, %v264_v16, %v328_v25  ;;  %v170_v33 = vsel %vm138_vm10, 0.0, %v106_v21  ;;  %v49_v15 = vld [vmem:[#allocation2 + $0xe0] sm:$0xff] }
  0x55   :  { %v391_v30 = vsub.f32 1.0, %v359_v27  ;;  %v600_v32 = vclamps-f32 %v169_v28, 3.4028235e+38  ;;  %v486_v34 = vsel %vm422_vm11, %v390_v22, %v454_v26  ;;  %v392_v35 = vsub.f32 1.0, %v360_v31 }
  0x56   :  { %v601_v36 = vclamps-f32 %v170_v33, 3.4028235e+38  ;;  %v107_v37 = vmul.f32 0.5, %v570_v18  ;;  %518 = vst [vmem:[#allocation5 + $0x88] sm:$0xff] %v486_v34  ;;  %v108_v53 = vmul.f32 0.5, %v571_v40  ;;  %v572_v54 = vadd.f32 0.5, %v45_v43 }
  0x57   :  { %vm423_vm12 = vcmp.ge.f32.partialorder %v391_v30, 0.0  ;;  %v455_v38 = vmul.f32 0.01, %v391_v30  ;;  %v265_v39 = vsub.f32 1.0, %v600_v32  ;;  %vm424_vm13 = vcmp.ge.f32.partialorder %v392_v35, 0.0  ;;  %v50_v34 = vld [vmem:[#allocation2 + $0xe8] sm:$0xff] }
  0x58   :  { %v456_v41 = vmul.f32 0.01, %v392_v35  ;;  %v266_v42 = vsub.f32 1.0, %v601_v36  ;;  %vm139_vm14 = vcmp.ne.f32.partialorder %v107_v37, %v107_v37  ;;  %v573_v55 = vadd.f32 0.5, %v46_v44  ;;  %v51_v44 = vld [vmem:[#allocation2 + $0xf0] sm:$0xff] }
  0x59   :  { %v487_v45 = vsel %vm423_vm12, %v391_v30, %v455_v38  ;;  %vm297_vm15 = vcmp.ge.f32.partialorder %v265_v39, 0.0  ;;  %v329_v46 = vmul.f32 0.01, %v265_v39  ;;  %v171_v47 = vsel %vm139_vm14, 0.0, %v107_v37 }
  0x5a   :  { %519 = vst [vmem:[#allocation5 + $0x90] sm:$0xff] %v487_v45  ;;  %v488_v49 = vsel %vm424_vm13, %v392_v35, %v456_v41  ;;  %vm298_vm0 = vcmp.ge.f32.partialorder %v266_v42, 0.0  ;;  %v330_v50 = vmul.f32 0.01, %v266_v42  ;;  %v602_v51 = vclamps-f32 %v171_v47, 3.4028235e+38 }
  0x5b   :  { %520 = vst [vmem:[#allocation5 + $0x98] sm:$0xff] %v488_v49  ;;  %v361_v52 = vsel %vm297_vm15, %v265_v39, %v329_v46  ;;  %v574_v59 = vadd.f32 0.5, %v47_v48  ;;  %vm140_vm1 = vcmp.ne.f32.partialorder %v108_v53, %v108_v53  ;;  %v109_v61 = vmul.f32 0.5, %v572_v54  ;;  %v52_v47 = vld [vmem:[#allocation2 + $0xf8] sm:$0xff] }
  0x5c   :  { %v393_v56 = vsub.f32 1.0, %v361_v52  ;;  %v362_v57 = vsel %vm298_vm0, %v266_v42, %v330_v50  ;;  %v267_v58 = vsub.f32 1.0, %v602_v51  ;;  %v110_v62 = vmul.f32 0.5, %v573_v55 }
  0x5d   :  { %v394_v60 = vsub.f32 1.0, %v362_v57  ;;  %v172_v2 = vsel %vm140_vm1, 0.0, %v108_v53  ;;  %vm141_vm5 = vcmp.ne.f32.partialorder %v109_v61, %v109_v61  ;;  %v111_v13 = vmul.f32 0.5, %v574_v59 }
  0x5e   :  { %vm425_vm2 = vcmp.ge.f32.partialorder %v393_v56, 0.0  ;;  %v457_v63 = vmul.f32 0.01, %v393_v56  ;;  %vm299_vm3 = vcmp.ge.f32.partialorder %v267_v58, 0.0  ;;  %v331_v0 = vmul.f32 0.01, %v267_v58 }
  0x5f   :  { %vm426_vm4 = vcmp.ge.f32.partialorder %v394_v60, 0.0  ;;  %v458_v1 = vmul.f32 0.01, %v394_v60  ;;  %v603_v6 = vclamps-f32 %v172_v2, 3.4028235e+38  ;;  %v173_v7 = vsel %vm141_vm5, 0.0, %v109_v61 }
  0x60   :  { %v489_v4 = vsel %vm425_vm2, %v393_v56, %v457_v63  ;;  %v363_v5 = vsel %vm299_vm3, %v267_v58, %v331_v0  ;;  %v604_v10 = vclamps-f32 %v173_v7, 3.4028235e+38  ;;  %vm142_vm6 = vcmp.ne.f32.partialorder %v110_v62, %v110_v62 }
  0x61   :  { %521 = vst [vmem:[#allocation5 + $0xa0] sm:$0xff] %v489_v4  ;;  %v490_v8 = vsel %vm426_vm4, %v394_v60, %v458_v1  ;;  %v395_v9 = vsub.f32 1.0, %v363_v5  ;;  %v268_v11 = vsub.f32 1.0, %v603_v6  ;;  %v174_v12 = vsel %vm142_vm6, 0.0, %v110_v62 }
  0x62   :  { %522 = vst [vmem:[#allocation5 + $0xa8] sm:$0xff] %v490_v8  ;;  %v575_v14 = vadd.f32 0.5, %v48_v3  ;;  %v269_v17 = vsub.f32 1.0, %v604_v10  ;;  %v605_v18 = vclamps-f32 %v174_v12, 3.4028235e+38  ;;  %vm143_vm9 = vcmp.ne.f32.partialorder %v111_v13, %v111_v13 }
  0x63   :  { %vm427_vm7 = vcmp.ge.f32.partialorder %v395_v9, 0.0  ;;  %v459_v16 = vmul.f32 0.01, %v395_v9  ;;  %vm300_vm8 = vcmp.ge.f32.partialorder %v268_v11, 0.0  ;;  %v332_v19 = vmul.f32 0.01, %v268_v11 }
  0x64   :  { %v112_v20 = vmul.f32 0.5, %v575_v14  ;;  %vm301_vm10 = vcmp.ge.f32.partialorder %v269_v17, 0.0  ;;  %v333_v22 = vmul.f32 0.01, %v269_v17  ;;  %v270_v23 = vsub.f32 1.0, %v605_v18 }
  0x65   :  { %v491_v21 = vsel %vm427_vm7, %v395_v9, %v459_v16  ;;  %v364_v24 = vsel %vm300_vm8, %v268_v11, %v332_v19  ;;  %v175_v25 = vsel %vm143_vm9, 0.0, %v111_v13  ;;  %v576_v26 = vadd.f32 0.5, %v49_v15 }
  0x66   :  { %523 = vst [vmem:[#allocation5 + $0xb0] sm:$0xff] %v491_v21  ;;  %vm144_vm11 = vcmp.ne.f32.partialorder %v112_v20, %v112_v20  ;;  %v396_v27 = vsub.f32 1.0, %v364_v24  ;;  %v365_v28 = vsel %vm301_vm10, %v269_v17, %v333_v22  ;;  %vm302_vm12 = vcmp.ge.f32.partialorder %v270_v23, 0.0 }
  0x67   :  { %v334_v29 = vmul.f32 0.01, %v270_v23  ;;  %v397_v30 = vsub.f32 1.0, %v365_v28  ;;  %v606_v31 = vclamps-f32 %v175_v25, 3.4028235e+38  ;;  %v176_v32 = vsel %vm144_vm11, 0.0, %v112_v20 }
  0x68   :  { %v113_v33 = vmul.f32 0.5, %v576_v26  ;;  %vm428_vm13 = vcmp.ge.f32.partialorder %v396_v27, 0.0  ;;  %v460_v35 = vmul.f32 0.01, %v396_v27  ;;  %v607_v37 = vclamps-f32 %v176_v32, 3.4028235e+38 }
  0x69   :  { %v366_v36 = vsel %vm302_vm12, %v270_v23, %v334_v29  ;;  %vm429_vm14 = vcmp.ge.f32.partialorder %v397_v30, 0.0  ;;  %v461_v38 = vmul.f32 0.01, %v397_v30  ;;  %v271_v40 = vsub.f32 1.0, %v606_v31 }
  0x6a   :  { %v398_v39 = vsub.f32 1.0, %v366_v36  ;;  %v492_v41 = vsel %vm428_vm13, %v396_v27, %v460_v35  ;;  %v272_v42 = vsub.f32 1.0, %v607_v37  ;;  %vm145_vm15 = vcmp.ne.f32.partialorder %v113_v33, %v113_v33 }
  0x6b   :  { %v577_v43 = vadd.f32 0.5, %v50_v34  ;;  %524 = vst [vmem:[#allocation5 + $0xb8] sm:$0xff] %v492_v41  ;;  %v493_v45 = vsel %vm429_vm14, %v397_v30, %v461_v38  ;;  %vm303_vm1 = vcmp.ge.f32.partialorder %v271_v40, 0.0  ;;  %v335_v48 = vmul.f32 0.01, %v271_v40 }
  0x6c   :  { %vm430_vm0 = vcmp.ge.f32.partialorder %v398_v39, 0.0  ;;  %v462_v46 = vmul.f32 0.01, %v398_v39  ;;  %525 = vst [vmem:[#allocation5 + $0xc0] sm:$0xff] %v493_v45  ;;  %vm304_vm2 = vcmp.ge.f32.partialorder %v272_v42, 0.0  ;;  %v177_v50 = vsel %vm145_vm15, 0.0, %v113_v33 }
  0x6d   :  { %v336_v49 = vmul.f32 0.01, %v272_v42  ;;  %v608_v52 = vclamps-f32 %v177_v50, 3.4028235e+38  ;;  %v114_v53 = vmul.f32 0.5, %v577_v43  ;;  %v578_v54 = vadd.f32 0.5, %v51_v44 }
  0x6e   :  { %v494_v51 = vsel %vm430_vm0, %v398_v39, %v462_v46  ;;  %v367_v55 = vsel %vm303_vm1, %v271_v40, %v335_v48  ;;  %v579_v57 = vadd.f32 0.5, %v52_v47 }
  0x6f   :  { %526 = vst [vmem:[#allocation5 + $0xc8] sm:$0xff] %v494_v51  ;;  %v368_v56 = vsel %vm304_vm2, %v272_v42, %v336_v49  ;;  %v399_v58 = vsub.f32 1.0, %v367_v55  ;;  %v273_v60 = vsub.f32 1.0, %v608_v52  ;;  %vm146_vm3 = vcmp.ne.f32.partialorder %v114_v53, %v114_v53 }
  0x70   :  { %v400_v59 = vsub.f32 1.0, %v368_v56  ;;  %v178_v61 = vsel %vm146_vm3, 0.0, %v114_v53  ;;  %v115_v62 = vmul.f32 0.5, %v578_v54  ;;  %v116_v63 = vmul.f32 0.5, %v579_v57 }
  0x71   :  { %vm431_vm4 = vcmp.ge.f32.partialorder %v399_v58, 0.0  ;;  %v463_v0 = vmul.f32 0.01, %v399_v58  ;;  %vm305_vm6 = vcmp.ge.f32.partialorder %v273_v60, 0.0  ;;  %v337_v2 = vmul.f32 0.01, %v273_v60 }
  0x72   :  { %vm432_vm5 = vcmp.ge.f32.partialorder %v400_v59, 0.0  ;;  %v464_v1 = vmul.f32 0.01, %v400_v59  ;;  %v609_v3 = vclamps-f32 %v178_v61, 3.4028235e+38  ;;  %vm147_vm7 = vcmp.ne.f32.partialorder %v115_v62, %v115_v62 }
  0x73   :  { %v495_v4 = vsel %vm431_vm4, %v399_v58, %v463_v0  ;;  %v179_v6 = vsel %vm147_vm7, 0.0, %v115_v62  ;;  %vm148_vm8 = vcmp.ne.f32.partialorder %v116_v63, %v116_v63  ;;  %v369_v7 = vsel %vm305_vm6, %v273_v60, %v337_v2 }
  0x74   :  { %v496_v5 = vsel %vm432_vm5, %v400_v59, %v464_v1  ;;  %527 = vst [vmem:[#allocation5 + $0xd0] sm:$0xff] %v495_v4  ;;  %v274_v8 = vsub.f32 1.0, %v609_v3  ;;  %v610_v9 = vclamps-f32 %v179_v6, 3.4028235e+38  ;;  %v180_v10 = vsel %vm148_vm8, 0.0, %v116_v63 }
  0x75   :  { %528 = vst [vmem:[#allocation5 + $0xd8] sm:$0xff] %v496_v5  ;;  %v401_v11 = vsub.f32 1.0, %v369_v7  ;;  %v611_v12 = vclamps-f32 %v180_v10, 3.4028235e+38 }
  0x76   :  { %vm306_vm9 = vcmp.ge.f32.partialorder %v274_v8, 0.0  ;;  %v338_v13 = vmul.f32 0.01, %v274_v8  ;;  %v275_v14 = vsub.f32 1.0, %v610_v9 }
  0x77   :  { %vm433_vm10 = vcmp.ge.f32.partialorder %v401_v11, 0.0  ;;  %v465_v15 = vmul.f32 0.01, %v401_v11  ;;  %v276_v16 = vsub.f32 1.0, %v611_v12 }
  0x78   :  { %v370_v17 = vsel %vm306_vm9, %v274_v8, %v338_v13  ;;  %vm307_vm11 = vcmp.ge.f32.partialorder %v275_v14, 0.0  ;;  %v339_v18 = vmul.f32 0.01, %v275_v14 }
  0x79   :  { %v497_v19 = vsel %vm433_vm10, %v401_v11, %v465_v15  ;;  %v402_v20 = vsub.f32 1.0, %v370_v17  ;;  %vm308_vm12 = vcmp.ge.f32.partialorder %v276_v16, 0.0  ;;  %v340_v21 = vmul.f32 0.01, %v276_v16 }
  0x7a   :  { %529 = vst [vmem:[#allocation5 + $0xe0] sm:$0xff] %v497_v19  ;;  %v371_v22 = vsel %vm307_vm11, %v275_v14, %v339_v18 }
  0x7b   :  { %vm434_vm13 = vcmp.ge.f32.partialorder %v402_v20, 0.0  ;;  %v466_v23 = vmul.f32 0.01, %v402_v20  ;;  %v403_v24 = vsub.f32 1.0, %v371_v22  ;;  %v372_v25 = vsel %vm308_vm12, %v276_v16, %v340_v21 }
  0x7c   :  { %v404_v26 = vsub.f32 1.0, %v372_v25 }
  0x7d   :  { %v498_v27 = vsel %vm434_vm13, %v402_v20, %v466_v23  ;;  %vm435_vm14 = vcmp.ge.f32.partialorder %v403_v24, 0.0  ;;  %v467_v28 = vmul.f32 0.01, %v403_v24 }
  0x7e   :  { %530 = vst [vmem:[#allocation5 + $0xe8] sm:$0xff] %v498_v27  ;;  %vm436_vm15 = vcmp.ge.f32.partialorder %v404_v26, 0.0  ;;  %v468_v29 = vmul.f32 0.01, %v404_v26 }
  0x7f   :  { %v499_v30 = vsel %vm435_vm14, %v403_v24, %v467_v28 }
  0x80   :  { %531 = vst [vmem:[#allocation5 + $0xf0] sm:$0xff] %v499_v30  ;;  %v500_v31 = vsel %vm436_vm15, %v404_v26, %v468_v29 }
  0x81   :  { %532 = vst [vmem:[#allocation5 + $0xf8] sm:$0xff] %v500_v31 }
  0x82   :  { %647 = shalt.err (!%p644_p12)
}
  0x83   :  { %s648_s22 = scalar_lea.hbm %s699_s1, 4096 }
  0x84   :  { %p649_p13 = scmp.ne.s32.totalorder %s699_s1, %s648_s22  ;;  %p652_p0 = scmp.lt.u32.totalorder %s648_s22, %s699_s1 }
  0x86   :  { %p654_p1 = pnand %p652_p0, %p649_p13 }
  0x88   :  { %657 = shalt.err (!%p654_p1)
}
  0x89   :  { %542 = dma.vmem_to_hbm [thread:$0]  %s540_s18, 4096, %s699_s1, [#allocation4]  }
  0x8a   :  { %660 = dma.done.wait [#allocation4], 4096  }
  0x8b   :  { %661 = vsyncadd [#allocation4], 4294963200 }
  0x8c   :  { %546 = vsyncpa [#allocation3], 1 }
  0x8d   :  { %547 = vsyncpa [#allocation4], 1 }

</bundles_post_ra>
